<compile_context>
chip_gen: v6e
topology: v6e:2x2x1
jax: 0.10.0
libtpu: 0.0.40
codegen_flags: <defaults>
</compile_context>

<pallas_src>
import functools

import jax
import jax.numpy as jnp
from jax.experimental import pallas as pl
from jax.experimental.pallas import tpu as pltpu


def _round_up(a: int, b: int) -> int:
    return (a + b - 1) // b * b


def _ffn_pred_kernel(x_ref, w1_ref, w2_ref, out_ref, acc_ref):
    # Grid: (I tiles [parallel], token tiles [arbitrary]); the token axis is
    # last so acc_ref / out_ref stay resident across the reduction.
    tok = pl.program_id(1)

    @pl.when(tok == 0)
    def _():
        acc_ref[...] = jnp.zeros_like(acc_ref)

    tn = x_ref.shape[0]
    r = w2_ref.shape[1]
    ti = acc_ref.shape[1]

    xt = x_ref[...]                                                    # (tn, H) bf16
    # Fused first stage: one MXU pass over the H contraction for both branches.
    h = jnp.dot(xt, w1_ref[...], preferred_element_type=jnp.float32)   # (tn, 2R) f32
    h0 = h[:, :r].astype(jnp.bfloat16)
    h1 = h[:, r:].astype(jnp.bfloat16)
    # Second stage: contract the rank against the current I tile.
    y0 = jnp.dot(h0, w2_ref[0], preferred_element_type=jnp.float32)    # (tn, tI) f32
    y1 = jnp.dot(h1, w2_ref[1], preferred_element_type=jnp.float32)    # (tn, tI) f32

    z = (y0 * jax.nn.sigmoid(y0)) * y1                                 # LigerSiLUMul, f32
    zz = z * z
    # Partial (8, tI) accumulator: vreg-aligned reshape + pure VPU adds.
    acc_ref[...] += zz.reshape(tn // 8, 8, ti).sum(axis=0)

    @pl.when(tok == pl.num_programs(1) - 1)
    def _():
        # Single cross-sublane collapse per I tile; lane-dense (1, tI) store.
        out_ref[...] = jnp.sum(acc_ref[...], axis=0, keepdims=True)


def _build_call(*, n_pad, i_pad, hidden, rank, tn, ti, single_buffer_weights):
    # Single-buffer the weight blocks (constant / rarely-changing index maps)
    # to halve their VMEM footprint; matters most on v7x's 64 MiB VMEM.
    wkw = {"pipeline_mode": pl.Buffered(1)} if single_buffer_weights else {}
    grid = (i_pad // ti, n_pad // tn)
    return pl.pallas_call(
        _ffn_pred_kernel,
        out_shape=jax.ShapeDtypeStruct((1, i_pad), jnp.float32),
        grid_spec=pltpu.PrefetchScalarGridSpec(
            num_scalar_prefetch=0,
            grid=grid,
            in_specs=[
                pl.BlockSpec((tn, hidden), lambda j, i: (i, 0)),               # token tile
                pl.BlockSpec((hidden, 2 * rank), lambda j, i: (0, 0), **wkw),  # fused w1
                pl.BlockSpec((2, rank, ti), lambda j, i: (0, 0, j), **wkw),    # w2 I-tile
            ],
            out_specs=pl.BlockSpec((1, ti), lambda j, i: (0, j)),              # resident acc target
            scratch_shapes=[pltpu.VMEM((8, ti), jnp.float32)],
        ),
        compiler_params=pltpu.CompilerParams(
            dimension_semantics=("parallel", "arbitrary"),
            vmem_limit_bytes=48 * 1024 * 1024,  # explicit budget; fits v7x's 64 MiB/TC
        ),
    )


def ffn_predictor_sumsq(x2d, w1, w2, *, tn=512, ti=512):
    """Per-intermediate-channel sum of squares over tokens. Returns (I,) f32."""
    n, hidden = x2d.shape
    _, _, rank = w1.shape
    _, _, inter = w2.shape

    tn = min(tn, _round_up(n, 8))          # sublane multiple, capped by (padded) N
    ti = min(ti, _round_up(inter, 128))    # lane multiple, capped by (padded) I
    n_pad = _round_up(n, tn)
    i_pad = _round_up(inter, ti)

    # bf16 MXU operands; gate math and accumulation stay in f32 inside the kernel.
    xb = x2d.astype(jnp.bfloat16)
    if n_pad != n:
        xb = jnp.pad(xb, ((0, n_pad - n), (0, 0)))       # zero rows contribute 0
    w1c = jnp.concatenate([w1[0], w1[1]], axis=-1).astype(jnp.bfloat16)   # (H, 2R)
    w2b = w2.astype(jnp.bfloat16)
    if i_pad != inter:
        w2b = jnp.pad(w2b, ((0, 0), (0, 0), (0, i_pad - inter)))          # zero cols contribute 0

    args = (xb, w1c, w2b)
    build = functools.partial(_build_call, n_pad=n_pad, i_pad=i_pad,
                              hidden=hidden, rank=rank, tn=tn, ti=ti)
    try:
        out = build(single_buffer_weights=True)(*args)
    except Exception:
        # pl.Buffered(1) not supported by this JAX build -> default double buffering.
        out = build(single_buffer_weights=False)(*args)
    return out[0, :inter]


def ffn_predictor_norms(x2d, w1, w2, **kw):
    """Per-channel L2 norm over tokens (sqrt done outside the kernel)."""
    return jnp.sqrt(ffn_predictor_sumsq(x2d, w1, w2, **kw))


def ffn_predictor_forward(x, w1, w2, sparsity, seq_avg=False):
    """Matches FFNPredictor.forward: flattened top-k intermediate-channel indices."""
    if seq_avg:
        x = jnp.mean(x, axis=1, keepdims=True)
    hidden = x.shape[-1]
    x2d = x.reshape(-1, hidden)              # == x.view(1, -1, H), shared by both branches
    ssq = ffn_predictor_sumsq(x2d, w1, w2)
    inter = ssq.shape[-1]
    k = int(inter * (1.0 - sparsity))
    # sqrt is monotone, so top-k on the sum of squares == top-k on the L2 norm.
    # TODO(synk): lax.top_k returns int32 (PyTorch returns int64) and may break ties differently.
    _, idx = jax.lax.top_k(ssq, k)
    return idx.flatten()


if __name__ == "__main__":
    batch, seq, hidden, rank, inter = 2, 8, 32, 16, 128
    sparsity = 0.75

    key = jax.random.PRNGKey(0)
    kx, k1, k2 = jax.random.split(key, 3)
    # activations in bf16 (typical model dtype; kernel feeds bf16 to the MXU)
    x = jax.random.normal(kx, (batch, seq, hidden), dtype=jnp.bfloat16)
    # deterministic stand-ins for the torch.randn registered buffers (f32)
    w1 = jax.random.normal(k1, (2, hidden, rank), dtype=jnp.float32)
    w2 = jax.random.normal(k2, (2, rank, inter), dtype=jnp.float32)

    idx = ffn_predictor_forward(x, w1, w2, sparsity, seq_avg=False)
    jax.block_until_ready(idx)
    assert idx.shape == (int(inter * (1.0 - sparsity)),)
    print("KERNEL_OK")
</pallas_src>

<mosaic_0001>
module attributes {stable_mosaic.version = 11 : i64} {
  func.func @_ffn_pred_kernel(%arg0: i32, %arg1: i32, %arg2: memref<16x32xbf16, #tpu.memory_space<vmem>>, %arg3: memref<32x32xbf16, #tpu.memory_space<vmem>>, %arg4: memref<2x16x128xbf16, #tpu.memory_space<vmem>>, %arg5: memref<1x128xf32, #tpu.memory_space<vmem>>, %arg6: memref<8x128xf32, #tpu.memory_space<vmem>>) attributes {dimension_semantics = [#tpu.dimension_semantics<parallel>, #tpu.dimension_semantics<arbitrary>], iteration_bounds = array<i64: 1, 1>, scalar_prefetch = 0 : i64, scratch_operands = 1 : i64, tpu.core_type = #tpu.core_type<tc>, window_params = [{transform_indices = @transform_0, window_bounds = array<i64: 16, 32>}, {pipeline_mode = #tpu.pipeline_mode<synchronous>, transform_indices = @transform_1, window_bounds = array<i64: 32, 32>}, {pipeline_mode = #tpu.pipeline_mode<synchronous>, transform_indices = @transform_2, window_bounds = array<i64: 2, 16, 128>}, {transform_indices = @transform_3, window_bounds = array<i64: 1, 128>}]} {
    %c0_i32 = arith.constant 0 : i32
    %0 = arith.cmpi eq, %arg1, %c0_i32 : i32
    %1 = arith.extui %0 : i1 to i32
    %c0_i32_0 = arith.constant 0 : i32
    %2 = arith.cmpi ne, %1, %c0_i32_0 : i32
    scf.if %2 {
      %cst_19 = arith.constant 0.000000e+00 : f32
      %32 = vector.broadcast %cst_19 : f32 to vector<8x128xf32>
      %c0_20 = arith.constant 0 : index
      %c0_21 = arith.constant 0 : index
      %33 = vector.load %arg6[%c0_20, %c0_21] : memref<8x128xf32, #tpu.memory_space<vmem>>, vector<8x128xf32>
      tpu.vector_store %arg6[%c0_20, %c0_21], %32 {strides = array<i32>} : memref<8x128xf32, #tpu.memory_space<vmem>>, vector<8x128xf32>,
    } else {
    }
    %c0 = arith.constant 0 : index
    %c0_1 = arith.constant 0 : index
    %3 = vector.load %arg2[%c0, %c0_1] : memref<16x32xbf16, #tpu.memory_space<vmem>>, vector<16x32xbf16>
    %c0_2 = arith.constant 0 : index
    %c0_3 = arith.constant 0 : index
    %4 = vector.load %arg3[%c0_2, %c0_3] : memref<32x32xbf16, #tpu.memory_space<vmem>>, vector<32x32xbf16>
    %cst = arith.constant dense<0.000000e+00> : vector<16x32xf32>
    %5 = tpu.matmul %3, %4, %cst {dimension_numbers = #tpu.dot_dimension_numbers<[1], [0], [0], [1], [0, 0, 1, 1], [], []>} : vector<16x32xbf16>, vector<32x32xbf16>, vector<16x32xf32> -> vector<16x32xf32>
    %6 = vector.extract_strided_slice %5 {offsets = [0, 0], sizes = [16, 16], strides = [1, 1]} : vector<16x32xf32> to vector<16x16xf32>
    %7 = arith.truncf %6 : vector<16x16xf32> to vector<16x16xbf16>
    %8 = vector.extract_strided_slice %5 {offsets = [0, 16], sizes = [16, 16], strides = [1, 1]} : vector<16x32xf32> to vector<16x16xf32>
    %9 = arith.truncf %8 : vector<16x16xf32> to vector<16x16xbf16>
    %c0_4 = arith.constant 0 : index
    %c0_5 = arith.constant 0 : index
    %c0_6 = arith.constant 0 : index
    %10 = vector.load %arg4[%c0_4, %c0_5, %c0_6] : memref<2x16x128xbf16, #tpu.memory_space<vmem>>, vector<1x16x128xbf16>
    %11 = vector.shape_cast %10 : vector<1x16x128xbf16> to vector<16x128xbf16>
    %cst_7 = arith.constant dense<0.000000e+00> : vector<16x128xf32>
    %12 = tpu.matmul %7, %11, %cst_7 {dimension_numbers = #tpu.dot_dimension_numbers<[1], [0], [0], [1], [0, 0, 1, 1], [], []>} : vector<16x16xbf16>, vector<16x128xbf16>, vector<16x128xf32> -> vector<16x128xf32>
    %c1 = arith.constant 1 : index
    %c0_8 = arith.constant 0 : index
    %c0_9 = arith.constant 0 : index
    %13 = vector.load %arg4[%c1, %c0_8, %c0_9] : memref<2x16x128xbf16, #tpu.memory_space<vmem>>, vector<1x16x128xbf16>
    %14 = vector.shape_cast %13 : vector<1x16x128xbf16> to vector<16x128xbf16>
    %cst_10 = arith.constant dense<0.000000e+00> : vector<16x128xf32>
    %15 = tpu.matmul %9, %14, %cst_10 {dimension_numbers = #tpu.dot_dimension_numbers<[1], [0], [0], [1], [0, 0, 1, 1], [], []>} : vector<16x16xbf16>, vector<16x128xbf16>, vector<16x128xf32> -> vector<16x128xf32>
    %16 = arith.negf %12 : vector<16x128xf32>
    %17 = math.exp %16 : vector<16x128xf32>
    %cst_11 = arith.constant 1.000000e+00 : f32
    %18 = vector.broadcast %cst_11 : f32 to vector<16x128xf32>
    %19 = arith.addf %18, %17 : vector<16x128xf32>
    %20 = arith.divf %18, %19 : vector<16x128xf32>
    %21 = arith.mulf %12, %20 : vector<16x128xf32>
    %22 = arith.mulf %21, %15 : vector<16x128xf32>
    %23 = arith.mulf %22, %22 : vector<16x128xf32>
    %c0_12 = arith.constant 0 : index
    %c0_13 = arith.constant 0 : index
    %24 = vector.load %arg6[%c0_12, %c0_13] : memref<8x128xf32, #tpu.memory_space<vmem>>, vector<8x128xf32>
    %25 = vector.shape_cast %23 : vector<16x128xf32> to vector<2x8x128xf32>
    %cst_14 = arith.constant dense<0.000000e+00> : vector<8x128xf32>
    %26 = vector.multi_reduction <add>, %25, %cst_14 [0] : vector<2x8x128xf32> to vector<8x128xf32>
    %27 = arith.addf %24, %26 : vector<8x128xf32>
    %c0_15 = arith.constant 0 : index
    %c0_16 = arith.constant 0 : index
    %28 = vector.load %arg6[%c0_15, %c0_16] : memref<8x128xf32, #tpu.memory_space<vmem>>, vector<8x128xf32>
    tpu.vector_store %arg6[%c0_15, %c0_16], %27 {strides = array<i32>} : memref<8x128xf32, #tpu.memory_space<vmem>>, vector<8x128xf32>,
    %c0_i32_17 = arith.constant 0 : i32
    %29 = arith.cmpi eq, %arg1, %c0_i32_17 : i32
    %30 = arith.extui %29 : i1 to i32
    %c0_i32_18 = arith.constant 0 : i32
    %31 = arith.cmpi ne, %30, %c0_i32_18 : i32
    scf.if %31 {
      %c0_19 = arith.constant 0 : index
      %c0_20 = arith.constant 0 : index
      %32 = vector.load %arg6[%c0_19, %c0_20] : memref<8x128xf32, #tpu.memory_space<vmem>>, vector<8x128xf32>
      %cst_21 = arith.constant dense<0.000000e+00> : vector<128xf32>
      %33 = vector.multi_reduction <add>, %32, %cst_21 [0] : vector<8x128xf32> to vector<128xf32>
      %34 = vector.shape_cast %33 : vector<128xf32> to vector<1x128xf32>
      %c0_22 = arith.constant 0 : index
      %c0_23 = arith.constant 0 : index
      %35 = vector.load %arg5[%c0_22, %c0_23] : memref<1x128xf32, #tpu.memory_space<vmem>>, vector<1x128xf32>
      tpu.vector_store %arg5[%c0_22, %c0_23], %34 {strides = array<i32>} : memref<1x128xf32, #tpu.memory_space<vmem>>, vector<1x128xf32>,
    } else {
    }
    return
  }
  func.func @transform_0(%arg0: i32, %arg1: i32) -> (i32, i32) {
    %c0_i32 = arith.constant 0 : i32
    %c0_i32_0 = arith.constant 0 : i32
    return %arg1, %c0_i32 : i32, i32
  }
  func.func @transform_1(%arg0: i32, %arg1: i32) -> (i32, i32) {
    %c0_i32 = arith.constant 0 : i32
    %c0_i32_0 = arith.constant 0 : i32
    %c0_i32_1 = arith.constant 0 : i32
    return %c0_i32, %c0_i32_0 : i32, i32
  }
  func.func @transform_2(%arg0: i32, %arg1: i32) -> (i32, i32, i32) {
    %c0_i32 = arith.constant 0 : i32
    %c0_i32_0 = arith.constant 0 : i32
    %c0_i32_1 = arith.constant 0 : i32
    return %c0_i32, %c0_i32_0, %arg0 : i32, i32, i32
  }
  func.func @transform_3(%arg0: i32, %arg1: i32) -> (i32, i32) {
    %c0_i32 = arith.constant 0 : i32
    %c0_i32_0 = arith.constant 0 : i32
    return %c0_i32, %arg0 : i32, i32
  }
}

module attributes {stable_mosaic.version = 11 : i64} {
  func.func @_ffn_pred_kernel(%arg0: i32, %arg1: i32, %arg2: memref<16x32xbf16, #tpu.memory_space<vmem>>, %arg3: memref<32x32xbf16, #tpu.memory_space<vmem>>, %arg4: memref<2x16x128xbf16, #tpu.memory_space<vmem>>, %arg5: memref<1x128xf32, #tpu.memory_space<vmem>>, %arg6: memref<8x128xf32, #tpu.memory_space<vmem>>) attributes {dimension_semantics = [#tpu.dimension_semantics<parallel>, #tpu.dimension_semantics<arbitrary>], iteration_bounds = array<i64: 1, 1>, scalar_prefetch = 0 : i64, scratch_operands = 1 : i64, tpu.core_type = #tpu.core_type<tc>, window_params = [{transform_indices = @transform_0, window_bounds = array<i64: 16, 32>}, {pipeline_mode = #tpu.pipeline_mode<synchronous>, transform_indices = @transform_1, window_bounds = array<i64: 32, 32>}, {transform_indices = @transform_2, window_bounds = array<i64: 2, 16, 128>}, {transform_indices = @transform_3, window_bounds = array<i64: 1, 128>}]} {
    %c0_i32 = arith.constant 0 : i32
    %0 = arith.cmpi eq, %arg1, %c0_i32 : i32
    %1 = arith.extui %0 : i1 to i32
    %c0_i32_0 = arith.constant 0 : i32
    %2 = arith.cmpi ne, %1, %c0_i32_0 : i32
    scf.if %2 {
      %cst_19 = arith.constant 0.000000e+00 : f32
      %32 = vector.broadcast %cst_19 : f32 to vector<8x128xf32>
      %c0_20 = arith.constant 0 : index
      %c0_21 = arith.constant 0 : index
      %33 = vector.load %arg6[%c0_20, %c0_21] : memref<8x128xf32, #tpu.memory_space<vmem>>, vector<8x128xf32>
      tpu.vector_store %arg6[%c0_20, %c0_21], %32 {strides = array<i32>} : memref<8x128xf32, #tpu.memory_space<vmem>>, vector<8x128xf32>,
    } else {
    }
    %c0 = arith.constant 0 : index
    %c0_1 = arith.constant 0 : index
    %3 = vector.load %arg2[%c0, %c0_1] : memref<16x32xbf16, #tpu.memory_space<vmem>>, vector<16x32xbf16>
    %c0_2 = arith.constant 0 : index
    %c0_3 = arith.constant 0 : index
    %4 = vector.load %arg3[%c0_2, %c0_3] : memref<32x32xbf16, #tpu.memory_space<vmem>>, vector<32x32xbf16>
    %cst = arith.constant dense<0.000000e+00> : vector<16x32xf32>
    %5 = tpu.matmul %3, %4, %cst {dimension_numbers = #tpu.dot_dimension_numbers<[1], [0], [0], [1], [0, 0, 1, 1], [], []>} : vector<16x32xbf16>, vector<32x32xbf16>, vector<16x32xf32> -> vector<16x32xf32>
    %6 = vector.extract_strided_slice %5 {offsets = [0, 0], sizes = [16, 16], strides = [1, 1]} : vector<16x32xf32> to vector<16x16xf32>
    %7 = arith.truncf %6 : vector<16x16xf32> to vector<16x16xbf16>
    %8 = vector.extract_strided_slice %5 {offsets = [0, 16], sizes = [16, 16], strides = [1, 1]} : vector<16x32xf32> to vector<16x16xf32>
    %9 = arith.truncf %8 : vector<16x16xf32> to vector<16x16xbf16>
    %c0_4 = arith.constant 0 : index
    %c0_5 = arith.constant 0 : index
    %c0_6 = arith.constant 0 : index
    %10 = vector.load %arg4[%c0_4, %c0_5, %c0_6] : memref<2x16x128xbf16, #tpu.memory_space<vmem>>, vector<1x16x128xbf16>
    %11 = vector.shape_cast %10 : vector<1x16x128xbf16> to vector<16x128xbf16>
    %cst_7 = arith.constant dense<0.000000e+00> : vector<16x128xf32>
    %12 = tpu.matmul %7, %11, %cst_7 {dimension_numbers = #tpu.dot_dimension_numbers<[1], [0], [0], [1], [0, 0, 1, 1], [], []>} : vector<16x16xbf16>, vector<16x128xbf16>, vector<16x128xf32> -> vector<16x128xf32>
    %c1 = arith.constant 1 : index
    %c0_8 = arith.constant 0 : index
    %c0_9 = arith.constant 0 : index
    %13 = vector.load %arg4[%c1, %c0_8, %c0_9] : memref<2x16x128xbf16, #tpu.memory_space<vmem>>, vector<1x16x128xbf16>
    %14 = vector.shape_cast %13 : vector<1x16x128xbf16> to vector<16x128xbf16>
    %cst_10 = arith.constant dense<0.000000e+00> : vector<16x128xf32>
    %15 = tpu.matmul %9, %14, %cst_10 {dimension_numbers = #tpu.dot_dimension_numbers<[1], [0], [0], [1], [0, 0, 1, 1], [], []>} : vector<16x16xbf16>, vector<16x128xbf16>, vector<16x128xf32> -> vector<16x128xf32>
    %16 = arith.negf %12 : vector<16x128xf32>
    %17 = math.exp %16 : vector<16x128xf32>
    %cst_11 = arith.constant 1.000000e+00 : f32
    %18 = vector.broadcast %cst_11 : f32 to vector<16x128xf32>
    %19 = arith.addf %18, %17 : vector<16x128xf32>
    %20 = arith.divf %18, %19 : vector<16x128xf32>
    %21 = arith.mulf %12, %20 : vector<16x128xf32>
    %22 = arith.mulf %21, %15 : vector<16x128xf32>
    %23 = arith.mulf %22, %22 : vector<16x128xf32>
    %c0_12 = arith.constant 0 : index
    %c0_13 = arith.constant 0 : index
    %24 = vector.load %arg6[%c0_12, %c0_13] : memref<8x128xf32, #tpu.memory_space<vmem>>, vector<8x128xf32>
    %25 = vector.shape_cast %23 : vector<16x128xf32> to vector<2x8x128xf32>
    %cst_14 = arith.constant dense<0.000000e+00> : vector<8x128xf32>
    %26 = vector.multi_reduction <add>, %25, %cst_14 [0] : vector<2x8x128xf32> to vector<8x128xf32>
    %27 = arith.addf %24, %26 : vector<8x128xf32>
    %c0_15 = arith.constant 0 : index
    %c0_16 = arith.constant 0 : index
    %28 = vector.load %arg6[%c0_15, %c0_16] : memref<8x128xf32, #tpu.memory_space<vmem>>, vector<8x128xf32>
    tpu.vector_store %arg6[%c0_15, %c0_16], %27 {strides = array<i32>} : memref<8x128xf32, #tpu.memory_space<vmem>>, vector<8x128xf32>,
    %c0_i32_17 = arith.constant 0 : i32
    %29 = arith.cmpi eq, %arg1, %c0_i32_17 : i32
    %30 = arith.extui %29 : i1 to i32
    %c0_i32_18 = arith.constant 0 : i32
    %31 = arith.cmpi ne, %30, %c0_i32_18 : i32
    scf.if %31 {
      %c0_19 = arith.constant 0 : index
      %c0_20 = arith.constant 0 : index
      %32 = vector.load %arg6[%c0_19, %c0_20] : memref<8x128xf32, #tpu.memory_space<vmem>>, vector<8x128xf32>
      %cst_21 = arith.constant dense<0.000000e+00> : vector<128xf32>
      %33 = vector.multi_reduction <add>, %32, %cst_21 [0] : vector<8x128xf32> to vector<128xf32>
      %34 = vector.shape_cast %33 : vector<128xf32> to vector<1x128xf32>
      %c0_22 = arith.constant 0 : index
      %c0_23 = arith.constant 0 : index
      %35 = vector.load %arg5[%c0_22, %c0_23] : memref<1x128xf32, #tpu.memory_space<vmem>>, vector<1x128xf32>
      tpu.vector_store %arg5[%c0_22, %c0_23], %34 {strides = array<i32>} : memref<1x128xf32, #tpu.memory_space<vmem>>, vector<1x128xf32>,
    } else {
    }
    return
  }
  func.func @transform_0(%arg0: i32, %arg1: i32) -> (i32, i32) {
    %c0_i32 = arith.constant 0 : i32
    %c0_i32_0 = arith.constant 0 : i32
    return %arg1, %c0_i32 : i32, i32
  }
  func.func @transform_1(%arg0: i32, %arg1: i32) -> (i32, i32) {
    %c0_i32 = arith.constant 0 : i32
    %c0_i32_0 = arith.constant 0 : i32
    %c0_i32_1 = arith.constant 0 : i32
    return %c0_i32, %c0_i32_0 : i32, i32
  }
  func.func @transform_2(%arg0: i32, %arg1: i32) -> (i32, i32, i32) {
    %c0_i32 = arith.constant 0 : i32
    %c0_i32_0 = arith.constant 0 : i32
    %c0_i32_1 = arith.constant 0 : i32
    return %c0_i32, %c0_i32_0, %arg0 : i32, i32, i32
  }
  func.func @transform_3(%arg0: i32, %arg1: i32) -> (i32, i32) {
    %c0_i32 = arith.constant 0 : i32
    %c0_i32_0 = arith.constant 0 : i32
    return %c0_i32, %arg0 : i32, i32
  }
}

</mosaic_0001>

<bundles_post_ra>
// kernel: tpu_custom_call.1
= control target key start
LH: loop header
LB: loop body
LE: loop exit
PB: predicated region body
PF: predicated region fallthrough
CT: control target
= control target key end

     0   :  { %8 = vsyncpa [#allocation4], 0  ;;  %s478_s0 = inlined_call_operand.hbm [shape: bf16[16,32], index: 0, kind: input, shape index: {}]   ;;  %s479_s1 = inlined_call_operand.hbm [shape: bf16[32,32], index: 1, kind: input, shape index: {}]   ;;  %s480_s2 = inlined_call_operand.hbm [shape: bf16[2,16,128], index: 2, kind: input, shape index: {}]   ;;  %s481_s3 = inlined_call_operand.hbm [shape: f32[1,128], index: 3, kind: output, shape index: {}]  }
   0x1   :  { %9 = vsyncpa [#allocation7], 0 }
   0x2   :  { %10 = vsyncpa [#allocation5], 0  ;;  %s434_s12 = smov [#allocation6]   ;;  %s435_s14 = smov [#allocation3]  }
   0x3   :  { %s28_s13 = sshll.u32 %s434_s12, 4  ;;  %s16_s15 = sshll.u32 %s435_s14, 4  ;;  %s29_s13 = int_to_ptr.vmem [resolvable:$true] %s28_s13  ;;  %s17_s15 = int_to_ptr.vmem [resolvable:$true] %s16_s15 }
   0x4   :  { %s356_s16 = scalar_lea.vmem %s29_s13, 256  ;;  %p361_p1 = scmp.lt.s32.totalorder %s29_s13, %s29_s13 }
   0x5   :  { %p357_p0 = scmp.ne.s32.totalorder %s29_s13, %s356_s16  ;;  %p362_p2 = scmp.lt.s32.totalorder %s356_s16, %s356_s16 }
   0x7   :  { %p363_p3 = por %p362_p2, %p361_p1 }
   0x9   :  { %p364_p4 = pnand %p363_p3, %p357_p0 }
   0xb   :  { %367 = shalt.err (!%p364_p4)
}
   0xc   :  { %s436_s17 = smov 64   ;;  %s437_s18 = smov 4  }
   0xd   :  { %34 = dma.hbm_to_vmem [thread:$0]  %s479_s1, 256, %s29_s13, [#allocation7], %s436_s17, %s436_s17, %s437_s18  }
   0xe   :  { %s376_s21 = scalar_lea.vmem %s17_s15, 128  ;;  %p381_p6 = scmp.lt.s32.totalorder %s17_s15, %s17_s15 }
   0xf   :  { %p377_p5 = scmp.ne.s32.totalorder %s17_s15, %s376_s21  ;;  %p382_p7 = scmp.lt.s32.totalorder %s376_s21, %s376_s21 }
  0x11   :  { %p383_p8 = por %p382_p7, %p381_p6 }
  0x13   :  { %p384_p9 = pnand %p383_p8, %p377_p5 }
  0x15   :  { %387 = shalt.err (!%p384_p9)
}
  0x16   :  { %22 = dma.hbm_to_vmem [thread:$0]  %s478_s0, 128, %s17_s15, [#allocation4], %s436_s17, %s436_s17, %s437_s18  }
  0x17   :  { %s438_s24 = smov [#allocation8]  }
  0x18   :  { %s40_s25 = sshll.u32 %s438_s24, 4  ;;  %s41_s25 = int_to_ptr.vmem [resolvable:$true] %s40_s25 }
  0x19   :  { %s396_s26 = scalar_lea.vmem %s41_s25, 256  ;;  %p401_p11 = scmp.lt.s32.totalorder %s41_s25, %s41_s25 }
  0x1a   :  { %p397_p10 = scmp.ne.s32.totalorder %s41_s25, %s396_s26  ;;  %p402_p12 = scmp.lt.s32.totalorder %s396_s26, %s396_s26 }
  0x1c   :  { %p403_p13 = por %p402_p12, %p401_p11 }
  0x1e   :  { %p404_p0 = pnand %p403_p13, %p397_p10 }
  0x20   :  { %407 = shalt.err (!%p404_p0)
}
  0x21   :  { %46 = dma.hbm_to_vmem [thread:$0]  %s480_s2, 256, %s41_s25, [#allocation7], %s436_s17, %s436_s17, %s437_s18  }
  0x22   :  { %428 = dma.done.wait [#allocation4], 128  }
  0x23   :  { %429 = vsyncadd [#allocation4], 4294967168 }
  0x24   :  { %430 = dma.done.wait [#allocation7], 512  }
  0x25   :  { %431 = vsyncadd [#allocation7], 4294966784  ;;  %v439_v0 = vmov 0.0   ;;  %vm440_vm0 = vmmov 0   ;;  %v335_v1 = vld [vmem:[#allocation6 + $0x8] sm:$0xff]   ;;  %v336_v2 = vld [vmem:[#allocation6] sm:$0xff]  }
  0x26   :  { %306 = vmatprep.subr.bf16.mxu0 %v439_v0  ;;  %310 = vmatprep.mubr.msk.bf16.mxu0 %vm440_vm0, %v439_v0  ;;  %v337_v3 = vld [vmem:[#allocation3] sm:$0xff]   ;;  %vm85_vm1 = vcmask 261120   ;;  %v338_v4 = vld [vmem:[#allocation8] sm:$0xff]   ;;  %vm139_vm2 = vcmask 130048   ;;  %s441_s0 = smov 112   ;;  %s442_s2 = smov [#allocation9]  }
  0x27   :  { %314 = vmatprep.subr.bf16.mxu1 %v439_v0  ;;  %316 = vmatprep.mubr.msk.bf16.mxu1 %vm440_vm0, %v439_v0  ;;  %v339_v8 = vld [vmem:[#allocation8 + $0x8] sm:$0xff]   ;;  %s279_s28 = sshll.u32 %s442_s2, 4  ;;  %s280_s28 = int_to_ptr.vmem [resolvable:$true] %s279_s28 }
  0x28   :  { %307 = vmatpush3.bf16.msra.mxu0 %v335_v1  ;;  %315 = vmatpush3.bf16.msra.mxu1 %v338_v4  ;;  %s408_s29 = scalar_lea.vmem %s280_s28, 16  ;;  %s412_s30 = scalar_lea.vmem %s280_s28, 32 }
  0x29   :  { %308 = vmatprep.subr.bf16.mxu0 %v439_v0  ;;  %320 = vmatprep.subr.bf16.mxu1 %v439_v0  ;;  %p409_p1 = scmp.ne.s32.totalorder %s280_s28, %s408_s29  ;;  %p413_p2 = scmp.lt.s32.totalorder %s280_s28, %s280_s28 }
  0x2a   :  { %p414_p3 = scmp.lt.s32.totalorder %s412_s30, %s408_s29 }
  0x2c   :  { %309 = vmatpush3.bf16.msra.mxu0 %v336_v2  ;;  %p415_p4 = por %p414_p3, %p413_p2 }
  0x2e   :  { %p416_p5 = pnand %p415_p4, %p409_p1 }
  0x2f   :  { %311 = vmatmul.mubr.msk.bf16.vlgmr.msra.gmra.mxu0 %vm85_vm1, %v337_v3 }
  0xef   :  { %v123_v5 = vpop.f32.mrf.mxu0 }
  0xf1   :  { %v312_v6 = vpop.f32.mrf.mxu0 }
  0xf3   :  { %v126_v7 = vpop.f32.mrf.mxu0 }
  0xf4   :  { %v130_v9 = vpack.c.bf16 %v126_v7, %v123_v5 }
  0xf5   :  { %v313_v10 = vpop.f32.mrf.mxu0 }
  0xf6   :  { %317 = vmatmul.mubr.msk.bf16.vlgmr.msra.gmra.mxu1 %vm139_vm2, %v130_v9  ;;  %188 = vrot.lane.b32.xlu0 %v130_v9, %s441_s0 }
  0xf7   :  { %321 = vmatpush3.bf16.msra.mxu1 %v339_v8  ;;  %322 = vmatprep.mubr.msk.bf16.mxu1 %vm440_vm0, %v439_v0 }
 0x168   :  { %v189_v11 = vpop.permute.xlu0 %188 }
 0x169   :  { %323 = vmatmul.mubr.msk.bf16.vlgmr.msra.gmra.mxu1 %vm139_vm2, %v189_v11 }
 0x1b6   :  { %v177_v12 = vpop.f32.mrf.mxu1 }
 0x1b7   :  { %v297_v16 = vmul.f32 -1.442695, %v177_v12 }
 0x1b8   :  { %v318_v13 = vpop.f32.mrf.mxu1 }
 0x1b9   :  { %340 = vpow2.f32 %v297_v16 }
 0x1ba   :  { %v180_v14 = vpop.f32.mrf.mxu1 }
 0x1bb   :  { %v298_v17 = vmul.f32 -1.442695, %v180_v14 }
 0x1bc   :  { %v319_v15 = vpop.f32.mrf.mxu1 }
 0x1bd   :  { %342 = vpow2.f32 %v298_v17 }
 0x1c6   :  { %v341_v18 = vpop.eup %340 }
 0x1c7   :  { %v246_v20 = vadd.f32 1.0, %v341_v18 }
 0x1c9   :  { %344 = vrcp.f32 %v246_v20 }
 0x1ca   :  { %v343_v19 = vpop.eup %342 }
 0x1cb   :  { %v247_v21 = vadd.f32 1.0, %v343_v19 }
 0x1cd   :  { %346 = vrcp.f32 %v247_v21 }
 0x1d6   :  { %v345_v22 = vpop.eup %344 }
 0x1d7   :  { %v252_v25 = vmul.f32 %v345_v22, %v177_v12 }
 0x1da   :  { %v347_v23 = vpop.eup %346 }
 0x1db   :  { %v253_v27 = vmul.f32 %v347_v23, %v180_v14 }
 0x229   :  { %v233_v24 = vpop.f32.mrf.mxu1 }
 0x22a   :  { %v254_v28 = vmul.f32 %v252_v25, %v233_v24 }
 0x22b   :  { %v324_v26 = vpop.f32.mrf.mxu1 }
 0x22c   :  { %v256_v32 = vmul.f32 %v254_v28, %v254_v28 }
 0x22d   :  { %v236_v29 = vpop.f32.mrf.mxu1 }
 0x22e   :  { %v255_v30 = vmul.f32 %v253_v27, %v236_v29 }
 0x22f   :  { %v325_v31 = vpop.f32.mrf.mxu1 }
 0x230   :  { %v257_v33 = vmul.f32 %v255_v30, %v255_v30 }
 0x232   :  { %v259_v34 = vadd.f32 %v257_v33, %v256_v32 }
 0x234   :  { %v266_v35 = vrot.slane %v259_v34, 4 }
 0x236   :  { %v267_v36 = vadd.f32 %v266_v35, %v259_v34 }
 0x238   :  { %v268_v37 = vrot.slane %v267_v36, 2 }
 0x23a   :  { %v269_v38 = vadd.f32 %v268_v37, %v267_v36 }
 0x23c   :  { %v270_v39 = vrot.slane %v269_v38, 1 }
 0x23e   :  { %v271_v40 = vadd.f32 %v270_v39, %v269_v38 }
 0x240   :  { %272 = vst [vmem:[#allocation9] sm:$0x1] %v271_v40 }
 0x241   :  { %419 = shalt.err (!%p416_p5)
}
 0x242   :  { %282 = dma.vmem_to_hbm [thread:$0]  %s280_s28, 16, %s481_s3, [#allocation5]  }
 0x243   :  { %432 = dma.done.wait [#allocation5], 16  }
 0x244   :  { %433 = vsyncadd [#allocation5], 4294967280 }
 0x245   :  { %286 = vsyncpa [#allocation4], 1 }
 0x246   :  { %287 = vsyncpa [#allocation7], 1 }
 0x247   :  { %288 = vsyncpa [#allocation5], 1 }

// kernel: tpu_custom_call.1
= control target key start
LH: loop header
LB: loop body
LE: loop exit
PB: predicated region body
PF: predicated region fallthrough
CT: control target
= control target key end

     0   :  { %8 = vsyncpa [#allocation4], 0  ;;  %s478_s0 = inlined_call_operand.hbm [shape: bf16[16,32], index: 0, kind: input, shape index: {}]   ;;  %s479_s1 = inlined_call_operand.hbm [shape: bf16[32,32], index: 1, kind: input, shape index: {}]   ;;  %s480_s2 = inlined_call_operand.hbm [shape: bf16[2,16,128], index: 2, kind: input, shape index: {}]   ;;  %s481_s3 = inlined_call_operand.hbm [shape: f32[1,128], index: 3, kind: output, shape index: {}]  }
   0x1   :  { %9 = vsyncpa [#allocation7], 0 }
   0x2   :  { %10 = vsyncpa [#allocation5], 0  ;;  %s434_s12 = smov [#allocation6]   ;;  %s435_s14 = smov [#allocation3]  }
   0x3   :  { %s28_s13 = sshll.u32 %s434_s12, 4  ;;  %s16_s15 = sshll.u32 %s435_s14, 4  ;;  %s29_s13 = int_to_ptr.vmem [resolvable:$true] %s28_s13  ;;  %s17_s15 = int_to_ptr.vmem [resolvable:$true] %s16_s15 }
   0x4   :  { %s356_s16 = scalar_lea.vmem %s29_s13, 256  ;;  %p361_p1 = scmp.lt.s32.totalorder %s29_s13, %s29_s13 }
   0x5   :  { %p357_p0 = scmp.ne.s32.totalorder %s29_s13, %s356_s16  ;;  %p362_p2 = scmp.lt.s32.totalorder %s356_s16, %s356_s16 }
   0x7   :  { %p363_p3 = por %p362_p2, %p361_p1 }
   0x9   :  { %p364_p4 = pnand %p363_p3, %p357_p0 }
   0xb   :  { %367 = shalt.err (!%p364_p4)
}
   0xc   :  { %s436_s17 = smov 64   ;;  %s437_s18 = smov 4  }
   0xd   :  { %34 = dma.hbm_to_vmem [thread:$0]  %s479_s1, 256, %s29_s13, [#allocation7], %s436_s17, %s436_s17, %s437_s18  }
   0xe   :  { %s376_s21 = scalar_lea.vmem %s17_s15, 128  ;;  %p381_p6 = scmp.lt.s32.totalorder %s17_s15, %s17_s15 }
   0xf   :  { %p377_p5 = scmp.ne.s32.totalorder %s17_s15, %s376_s21  ;;  %p382_p7 = scmp.lt.s32.totalorder %s376_s21, %s376_s21 }
  0x11   :  { %p383_p8 = por %p382_p7, %p381_p6 }
  0x13   :  { %p384_p9 = pnand %p383_p8, %p377_p5 }
  0x15   :  { %387 = shalt.err (!%p384_p9)
}
  0x16   :  { %22 = dma.hbm_to_vmem [thread:$0]  %s478_s0, 128, %s17_s15, [#allocation4], %s436_s17, %s436_s17, %s437_s18  }
  0x17   :  { %s438_s24 = smov [#allocation8]  }
  0x18   :  { %s40_s25 = sshll.u32 %s438_s24, 4  ;;  %s41_s25 = int_to_ptr.vmem [resolvable:$true] %s40_s25 }
  0x19   :  { %s396_s26 = scalar_lea.vmem %s41_s25, 256  ;;  %p401_p11 = scmp.lt.s32.totalorder %s41_s25, %s41_s25 }
  0x1a   :  { %p397_p10 = scmp.ne.s32.totalorder %s41_s25, %s396_s26  ;;  %p402_p12 = scmp.lt.s32.totalorder %s396_s26, %s396_s26 }
  0x1c   :  { %p403_p13 = por %p402_p12, %p401_p11 }
  0x1e   :  { %p404_p0 = pnand %p403_p13, %p397_p10 }
  0x20   :  { %407 = shalt.err (!%p404_p0)
}
  0x21   :  { %46 = dma.hbm_to_vmem [thread:$0]  %s480_s2, 256, %s41_s25, [#allocation7], %s436_s17, %s436_s17, %s437_s18  }
  0x22   :  { %428 = dma.done.wait [#allocation4], 128  }
  0x23   :  { %429 = vsyncadd [#allocation4], 4294967168 }
  0x24   :  { %430 = dma.done.wait [#allocation7], 512  }
  0x25   :  { %431 = vsyncadd [#allocation7], 4294966784  ;;  %v439_v0 = vmov 0.0   ;;  %vm440_vm0 = vmmov 0   ;;  %v335_v1 = vld [vmem:[#allocation6 + $0x8] sm:$0xff]   ;;  %v336_v2 = vld [vmem:[#allocation6] sm:$0xff]  }
  0x26   :  { %306 = vmatprep.subr.bf16.mxu0 %v439_v0  ;;  %310 = vmatprep.mubr.msk.bf16.mxu0 %vm440_vm0, %v439_v0  ;;  %v337_v3 = vld [vmem:[#allocation3] sm:$0xff]   ;;  %vm85_vm1 = vcmask 261120   ;;  %v338_v4 = vld [vmem:[#allocation8] sm:$0xff]   ;;  %vm139_vm2 = vcmask 130048   ;;  %s441_s0 = smov 112   ;;  %s442_s2 = smov [#allocation9]  }
  0x27   :  { %314 = vmatprep.subr.bf16.mxu1 %v439_v0  ;;  %316 = vmatprep.mubr.msk.bf16.mxu1 %vm440_vm0, %v439_v0  ;;  %v339_v8 = vld [vmem:[#allocation8 + $0x8] sm:$0xff]   ;;  %s279_s28 = sshll.u32 %s442_s2, 4  ;;  %s280_s28 = int_to_ptr.vmem [resolvable:$true] %s279_s28 }
  0x28   :  { %307 = vmatpush3.bf16.msra.mxu0 %v335_v1  ;;  %315 = vmatpush3.bf16.msra.mxu1 %v338_v4  ;;  %s408_s29 = scalar_lea.vmem %s280_s28, 16  ;;  %s412_s30 = scalar_lea.vmem %s280_s28, 32 }
  0x29   :  { %308 = vmatprep.subr.bf16.mxu0 %v439_v0  ;;  %320 = vmatprep.subr.bf16.mxu1 %v439_v0  ;;  %p409_p1 = scmp.ne.s32.totalorder %s280_s28, %s408_s29  ;;  %p413_p2 = scmp.lt.s32.totalorder %s280_s28, %s280_s28 }
  0x2a   :  { %p414_p3 = scmp.lt.s32.totalorder %s412_s30, %s408_s29 }
  0x2c   :  { %309 = vmatpush3.bf16.msra.mxu0 %v336_v2  ;;  %p415_p4 = por %p414_p3, %p413_p2 }
  0x2e   :  { %p416_p5 = pnand %p415_p4, %p409_p1 }
  0x2f   :  { %311 = vmatmul.mubr.msk.bf16.vlgmr.msra.gmra.mxu0 %vm85_vm1, %v337_v3 }
  0xef   :  { %v123_v5 = vpop.f32.mrf.mxu0 }
  0xf1   :  { %v312_v6 = vpop.f32.mrf.mxu0 }
  0xf3   :  { %v126_v7 = vpop.f32.mrf.mxu0 }
  0xf4   :  { %v130_v9 = vpack.c.bf16 %v126_v7, %v123_v5 }
  0xf5   :  { %v313_v10 = vpop.f32.mrf.mxu0 }
  0xf6   :  { %317 = vmatmul.mubr.msk.bf16.vlgmr.msra.gmra.mxu1 %vm139_vm2, %v130_v9  ;;  %188 = vrot.lane.b32.xlu0 %v130_v9, %s441_s0 }
  0xf7   :  { %321 = vmatpush3.bf16.msra.mxu1 %v339_v8  ;;  %322 = vmatprep.mubr.msk.bf16.mxu1 %vm440_vm0, %v439_v0 }
 0x168   :  { %v189_v11 = vpop.permute.xlu0 %188 }
 0x169   :  { %323 = vmatmul.mubr.msk.bf16.vlgmr.msra.gmra.mxu1 %vm139_vm2, %v189_v11 }
 0x1b6   :  { %v177_v12 = vpop.f32.mrf.mxu1 }
 0x1b7   :  { %v297_v16 = vmul.f32 -1.442695, %v177_v12 }
 0x1b8   :  { %v318_v13 = vpop.f32.mrf.mxu1 }
 0x1b9   :  { %340 = vpow2.f32 %v297_v16 }
 0x1ba   :  { %v180_v14 = vpop.f32.mrf.mxu1 }
 0x1bb   :  { %v298_v17 = vmul.f32 -1.442695, %v180_v14 }
 0x1bc   :  { %v319_v15 = vpop.f32.mrf.mxu1 }
 0x1bd   :  { %342 = vpow2.f32 %v298_v17 }
 0x1c6   :  { %v341_v18 = vpop.eup %340 }
 0x1c7   :  { %v246_v20 = vadd.f32 1.0, %v341_v18 }
 0x1c9   :  { %344 = vrcp.f32 %v246_v20 }
 0x1ca   :  { %v343_v19 = vpop.eup %342 }
 0x1cb   :  { %v247_v21 = vadd.f32 1.0, %v343_v19 }
 0x1cd   :  { %346 = vrcp.f32 %v247_v21 }
 0x1d6   :  { %v345_v22 = vpop.eup %344 }
 0x1d7   :  { %v252_v25 = vmul.f32 %v345_v22, %v177_v12 }
 0x1da   :  { %v347_v23 = vpop.eup %346 }
 0x1db   :  { %v253_v27 = vmul.f32 %v347_v23, %v180_v14 }
 0x229   :  { %v233_v24 = vpop.f32.mrf.mxu1 }
 0x22a   :  { %v254_v28 = vmul.f32 %v252_v25, %v233_v24 }
 0x22b   :  { %v324_v26 = vpop.f32.mrf.mxu1 }
 0x22c   :  { %v256_v32 = vmul.f32 %v254_v28, %v254_v28 }
 0x22d   :  { %v236_v29 = vpop.f32.mrf.mxu1 }
 0x22e   :  { %v255_v30 = vmul.f32 %v253_v27, %v236_v29 }
 0x22f   :  { %v325_v31 = vpop.f32.mrf.mxu1 }
 0x230   :  { %v257_v33 = vmul.f32 %v255_v30, %v255_v30 }
 0x232   :  { %v259_v34 = vadd.f32 %v257_v33, %v256_v32 }
 0x234   :  { %v266_v35 = vrot.slane %v259_v34, 4 }
 0x236   :  { %v267_v36 = vadd.f32 %v266_v35, %v259_v34 }
 0x238   :  { %v268_v37 = vrot.slane %v267_v36, 2 }
 0x23a   :  { %v269_v38 = vadd.f32 %v268_v37, %v267_v36 }
 0x23c   :  { %v270_v39 = vrot.slane %v269_v38, 1 }
 0x23e   :  { %v271_v40 = vadd.f32 %v270_v39, %v269_v38 }
 0x240   :  { %272 = vst [vmem:[#allocation9] sm:$0x1] %v271_v40 }
 0x241   :  { %419 = shalt.err (!%p416_p5)
}
 0x242   :  { %282 = dma.vmem_to_hbm [thread:$0]  %s280_s28, 16, %s481_s3, [#allocation5]  }
 0x243   :  { %432 = dma.done.wait [#allocation5], 16  }
 0x244   :  { %433 = vsyncadd [#allocation5], 4294967280 }
 0x245   :  { %286 = vsyncpa [#allocation4], 1 }
 0x246   :  { %287 = vsyncpa [#allocation7], 1 }
 0x247   :  { %288 = vsyncpa [#allocation5], 1 }

</bundles_post_ra>
